<compile_context>
chip_gen: v7x
topology: tpu7x:2x2x1
jax: 0.10.0
libtpu: 0.0.40
codegen_flags: <defaults>
</compile_context>

<pallas_src>
import functools

import jax
import jax.numpy as jnp
from jax.experimental import pallas as pl
from jax.experimental.pallas import tpu as pltpu

BN_EPS = 1e-5


def _round_up(x, m):
    return (x + m - 1) // m * m


def _fr_kernel(x_ref, w_ref, g_ref, b_ref, o_ref,
               sum_ref, sq_ref, scale_ref, shift_ref, *, inv_m):
    # x_ref : (TM, 2*C_in) bf16  -- [even-grid | odd-grid] samples, pre-concatenated
    # w_ref : (2*C_in, C_out) bf16 -- block-diagonal fused conv weight (resident)
    # g_ref, b_ref : (1, C_out) f32 -- BN affine params
    # o_ref : (TM, C_out) f32
    # scratch: per-channel sum / sumsq / scale / shift, (1, C_out) f32 each
    phase = pl.program_id(0)
    t = pl.program_id(1)

    x = jnp.maximum(x_ref[...], 0)  # ReLU (elementwise, commutes with subsample)
    # One bf16 MXU matmul == both 1x1 convs + channel concat (f32 accumulate).
    y = jnp.dot(x, w_ref[...], preferred_element_type=jnp.float32)  # (TM, C_out)

    @pl.when(phase == 0)
    def _stats():
        @pl.when(t == 0)
        def _init():
            sum_ref[...] = jnp.zeros_like(sum_ref)
            sq_ref[...] = jnp.zeros_like(sq_ref)

        sum_ref[...] += jnp.sum(y, axis=0, keepdims=True)
        sq_ref[...] += jnp.sum(y * y, axis=0, keepdims=True)

        @pl.when(t == pl.num_programs(1) - 1)
        def _finalize():
            mean = sum_ref[...] * inv_m
            var = jnp.maximum(sq_ref[...] * inv_m - mean * mean, 0.0)  # biased var, f32
            scale = g_ref[...] * jax.lax.rsqrt(var + BN_EPS)
            scale_ref[...] = scale
            shift_ref[...] = b_ref[...] - mean * scale

    @pl.when(phase == 1)
    def _normalize():
        o_ref[...] = y * scale_ref[...] + shift_ref[...]


def factorized_reduce(x_nchw, w1, w2, gamma, beta, *, tile_m=1024):
    """x_nchw: (N, C_in, H, W) f32; w1, w2: (C_half, C_in) (1x1 conv weights with
    the kernel dims squeezed); gamma, beta: (C_out,). Returns NCHW (N, C_out, H//2, W//2)."""
    N, C_in, H, W = x_nchw.shape
    C_half = w1.shape[0]
    C_out = 2 * C_half
    assert H % 2 == 0 and W % 2 == 0, "even spatial dims required for concat to line up"
    Ho, Wo = H // 2, W // 2
    M = N * Ho * Wo

    # ---- layout glue (fuses into ~one XLA pass under jit; no arithmetic) ----
    x_nhwc = jnp.transpose(x_nchw, (0, 2, 3, 1))                      # (N, H, W, C_in)
    x1 = x_nhwc[:, 0::2, 0::2, :].reshape(M, C_in)                    # conv_1 sample grid
    x2 = x_nhwc[:, 1::2, 1::2, :].reshape(M, C_in)                    # conv_2 grid (x[:,:,1:,1:], s2)
    x12 = jnp.concatenate([x1, x2], axis=-1).astype(jnp.bfloat16)     # (M, 2*C_in)

    # Block-diagonal fused weight: [x1|x2] @ W_fused == concat(x1@w1.T, x2@w2.T).
    z = jnp.zeros((C_in, C_half), jnp.float32)
    w_fused = jnp.concatenate(
        [jnp.concatenate([w1.T.astype(jnp.float32), z], axis=1),
         jnp.concatenate([z, w2.T.astype(jnp.float32)], axis=1)],
        axis=0).astype(jnp.bfloat16)                                  # (2*C_in, C_out)

    g = gamma.reshape(1, C_out).astype(jnp.float32)
    b = beta.reshape(1, C_out).astype(jnp.float32)

    # ---- tiling over M; zero rows pad the last tile (zeros contribute nothing
    # to the BN sums; the divisor below is the true M) ----
    TM = min(_round_up(M, 8), _round_up(tile_m, 8))
    M_pad = _round_up(M, TM)
    if M_pad != M:
        x12 = jnp.pad(x12, ((0, M_pad - M), (0, 0)))
    num_tiles = M_pad // TM

    # Explicit VMEM budget: double-buffered in/out blocks + resident weights + scratch.
    need = (2 * (TM * 2 * C_in * 2 + TM * C_out * 4)
            + 2 * C_in * C_out * 2 + 4 * 8 * max(C_out, 128) * 4)
    vmem_limit = int(min(max(4 * need, 16 * 2**20), 32 * 2**20))

    kernel = functools.partial(_fr_kernel, inv_m=1.0 / M)

    out_flat = pl.pallas_call(
        kernel,
        out_shape=jax.ShapeDtypeStruct((M_pad, C_out), jnp.float32),
        grid_spec=pltpu.PrefetchScalarGridSpec(
            num_scalar_prefetch=0,
            grid=(2, num_tiles),                                   # (phase, tile)
            in_specs=[
                pl.BlockSpec((TM, 2 * C_in), lambda p, t: (t, 0)),
                pl.BlockSpec((2 * C_in, C_out), lambda p, t: (0, 0)),  # weights resident
                pl.BlockSpec((1, C_out), lambda p, t: (0, 0)),
                pl.BlockSpec((1, C_out), lambda p, t: (0, 0)),
            ],
            # phase 0 pins the out block to index 0 (nothing written -> no garbage
            # writeback); phase 1 walks the tiles and writes each block exactly once.
            out_specs=pl.BlockSpec((TM, C_out), lambda p, t: (p * t, 0)),
            scratch_shapes=[pltpu.VMEM((1, C_out), jnp.float32)] * 4,
        ),
        compiler_params=pltpu.CompilerParams(
            # Both axes carry sequential state (global BN stats, then their reuse),
            # so they must stay 'arbitrary' (no megacore split of the stats).
            dimension_semantics=("arbitrary", "arbitrary"),
            vmem_limit_bytes=vmem_limit,
        ),
    )(x12, w_fused, g, b)

    # ---- glue: back to NCHW ----
    out = out_flat[:M].reshape(N, Ho, Wo, C_out)
    return jnp.transpose(out, (0, 3, 1, 2))


def _reference_f32(x, w1, w2, gamma, beta):
    # Pure-f32 reference of the PyTorch forward (training-mode BN).
    xr = jnp.maximum(x, 0.0)
    x1 = xr[:, :, 0::2, 0::2]
    x2 = xr[:, :, 1::2, 1::2]
    y1 = jnp.einsum("nchw,oc->nohw", x1, w1)
    y2 = jnp.einsum("nchw,oc->nohw", x2, w2)
    y = jnp.concatenate([y1, y2], axis=1)
    mean = y.mean(axis=(0, 2, 3), keepdims=True)
    var = y.var(axis=(0, 2, 3), keepdims=True)
    yhat = (y - mean) / jnp.sqrt(var + BN_EPS)
    return yhat * gamma.reshape(1, -1, 1, 1) + beta.reshape(1, -1, 1, 1)


def _reference_bf16(x, w1, w2, gamma, beta):
    # Same math with bf16 conv operands (matching the kernel's MXU inputs); BN in f32.
    xr = jnp.maximum(x, 0.0)
    x1 = xr[:, :, 0::2, 0::2].astype(jnp.bfloat16)
    x2 = xr[:, :, 1::2, 1::2].astype(jnp.bfloat16)
    y1 = jnp.einsum("nchw,oc->nohw", x1, w1.astype(jnp.bfloat16),
                    preferred_element_type=jnp.float32)
    y2 = jnp.einsum("nchw,oc->nohw", x2, w2.astype(jnp.bfloat16),
                    preferred_element_type=jnp.float32)
    y = jnp.concatenate([y1, y2], axis=1)
    mean = y.mean(axis=(0, 2, 3), keepdims=True)
    var = y.var(axis=(0, 2, 3), keepdims=True)
    yhat = (y - mean) / jnp.sqrt(var + BN_EPS)
    return yhat * gamma.reshape(1, -1, 1, 1) + beta.reshape(1, -1, 1, 1)


if __name__ == "__main__":
    key = jax.random.PRNGKey(0)
    N, C_in, H, W = 2, 4, 16, 16
    C_out = 8
    C_half = C_out // 2

    k_x, k_w1, k_w2 = jax.random.split(key, 3)
    x = jax.random.normal(k_x, (N, C_in, H, W), dtype=jnp.float32)
    # Conv2d(C_in, C_out//2, 1) weights, 1x1 kernel dims squeezed -> (C_half, C_in)
    w1 = jax.random.normal(k_w1, (C_half, C_in), dtype=jnp.float32) * 0.5
    w2 = jax.random.normal(k_w2, (C_half, C_in), dtype=jnp.float32) * 0.5
    gamma = jnp.ones((C_out,), dtype=jnp.float32)   # nn.BatchNorm2d affine init
    beta = jnp.zeros((C_out,), dtype=jnp.float32)

    fr = jax.jit(factorized_reduce)
    out = jax.block_until_ready(fr(x, w1, w2, gamma, beta))
    assert out.shape == (N, C_out, H // 2, W // 2), out.shape

    ref_bf16 = _reference_bf16(x, w1, w2, gamma, beta)
    assert jnp.allclose(out, ref_bf16, atol=2e-3, rtol=2e-3), \
        float(jnp.abs(out - ref_bf16).max())

    ref_f32 = _reference_f32(x, w1, w2, gamma, beta)   # bf16 operands vs f32 PyTorch: loose tol
    assert jnp.allclose(out, ref_f32, atol=5e-2, rtol=5e-2), \
        float(jnp.abs(out - ref_f32).max())

    print("KERNEL_OK")
</pallas_src>

<mosaic_0001>
module attributes {stable_mosaic.version = 11 : i64} {
  func.func @_fr_kernel(%arg0: i32, %arg1: i32, %arg2: memref<128x8xbf16, #tpu.memory_space<vmem>>, %arg3: memref<8x8xbf16, #tpu.memory_space<vmem>>, %arg4: memref<1x8xf32, #tpu.memory_space<vmem>>, %arg5: memref<1x8xf32, #tpu.memory_space<vmem>>, %arg6: memref<128x8xf32, #tpu.memory_space<vmem>>, %arg7: memref<1x8xf32, #tpu.memory_space<vmem>>, %arg8: memref<1x8xf32, #tpu.memory_space<vmem>>, %arg9: memref<1x8xf32, #tpu.memory_space<vmem>>, %arg10: memref<1x8xf32, #tpu.memory_space<vmem>>) attributes {dimension_semantics = [#tpu.dimension_semantics<arbitrary>, #tpu.dimension_semantics<arbitrary>], iteration_bounds = array<i64: 2, 1>, scalar_prefetch = 0 : i64, scratch_operands = 4 : i64, tpu.core_type = #tpu.core_type<tc>, window_params = [{transform_indices = @transform_0, window_bounds = array<i64: 128, 8>}, {pipeline_mode = #tpu.pipeline_mode<synchronous>, transform_indices = @transform_1, window_bounds = array<i64: 8, 8>}, {pipeline_mode = #tpu.pipeline_mode<synchronous>, transform_indices = @transform_2, window_bounds = array<i64: 1, 8>}, {pipeline_mode = #tpu.pipeline_mode<synchronous>, transform_indices = @transform_3, window_bounds = array<i64: 1, 8>}, {transform_indices = @transform_4, window_bounds = array<i64: 128, 8>}]} {
    %c0 = arith.constant 0 : index
    %c0_0 = arith.constant 0 : index
    %0 = vector.load %arg2[%c0, %c0_0] : memref<128x8xbf16, #tpu.memory_space<vmem>>, vector<128x8xbf16>
    %cst = arith.constant 0.000000e+00 : bf16
    %1 = vector.broadcast %cst : bf16 to vector<128x8xbf16>
    %2 = arith.maximumf %0, %1 : vector<128x8xbf16>
    %c0_1 = arith.constant 0 : index
    %c0_2 = arith.constant 0 : index
    %3 = vector.load %arg3[%c0_1, %c0_2] : memref<8x8xbf16, #tpu.memory_space<vmem>>, vector<8x8xbf16>
    %cst_3 = arith.constant dense<0.000000e+00> : vector<128x8xf32>
    %4 = tpu.matmul %2, %3, %cst_3 {dimension_numbers = #tpu.dot_dimension_numbers<[1], [0], [0], [1], [0, 0, 1, 1], [], []>} : vector<128x8xbf16>, vector<8x8xbf16>, vector<128x8xf32> -> vector<128x8xf32>
    %c0_i32 = arith.constant 0 : i32
    %5 = arith.cmpi eq, %arg0, %c0_i32 : i32
    %6 = arith.extui %5 : i1 to i32
    %c0_i32_4 = arith.constant 0 : i32
    %7 = arith.cmpi ne, %6, %c0_i32_4 : i32
    scf.if %7 {
      %c0_i32_6 = arith.constant 0 : i32
      %11 = arith.cmpi eq, %arg1, %c0_i32_6 : i32
      %12 = arith.extui %11 : i1 to i32
      %c0_i32_7 = arith.constant 0 : i32
      %13 = arith.cmpi ne, %12, %c0_i32_7 : i32
      scf.if %13 {
        %cst_20 = arith.constant 0.000000e+00 : f32
        %28 = vector.broadcast %cst_20 : f32 to vector<1x8xf32>
        %c0_21 = arith.constant 0 : index
        %c0_22 = arith.constant 0 : index
        %29 = vector.load %arg7[%c0_21, %c0_22] : memref<1x8xf32, #tpu.memory_space<vmem>>, vector<1x8xf32>
        tpu.vector_store %arg7[%c0_21, %c0_22], %28 {strides = array<i32>} : memref<1x8xf32, #tpu.memory_space<vmem>>, vector<1x8xf32>,
        %cst_23 = arith.constant 0.000000e+00 : f32
        %30 = vector.broadcast %cst_23 : f32 to vector<1x8xf32>
        %c0_24 = arith.constant 0 : index
        %c0_25 = arith.constant 0 : index
        %31 = vector.load %arg8[%c0_24, %c0_25] : memref<1x8xf32, #tpu.memory_space<vmem>>, vector<1x8xf32>
        tpu.vector_store %arg8[%c0_24, %c0_25], %30 {strides = array<i32>} : memref<1x8xf32, #tpu.memory_space<vmem>>, vector<1x8xf32>,
      } else {
      }
      %c0_8 = arith.constant 0 : index
      %c0_9 = arith.constant 0 : index
      %14 = vector.load %arg7[%c0_8, %c0_9] : memref<1x8xf32, #tpu.memory_space<vmem>>, vector<1x8xf32>
      %cst_10 = arith.constant dense<0.000000e+00> : vector<8xf32>
      %15 = vector.multi_reduction <add>, %4, %cst_10 [0] : vector<128x8xf32> to vector<8xf32>
      %16 = vector.shape_cast %15 : vector<8xf32> to vector<1x8xf32>
      %17 = arith.addf %14, %16 : vector<1x8xf32>
      %c0_11 = arith.constant 0 : index
      %c0_12 = arith.constant 0 : index
      %18 = vector.load %arg7[%c0_11, %c0_12] : memref<1x8xf32, #tpu.memory_space<vmem>>, vector<1x8xf32>
      tpu.vector_store %arg7[%c0_11, %c0_12], %17 {strides = array<i32>} : memref<1x8xf32, #tpu.memory_space<vmem>>, vector<1x8xf32>,
      %c0_13 = arith.constant 0 : index
      %c0_14 = arith.constant 0 : index
      %19 = vector.load %arg8[%c0_13, %c0_14] : memref<1x8xf32, #tpu.memory_space<vmem>>, vector<1x8xf32>
      %20 = arith.mulf %4, %4 : vector<128x8xf32>
      %cst_15 = arith.constant dense<0.000000e+00> : vector<8xf32>
      %21 = vector.multi_reduction <add>, %20, %cst_15 [0] : vector<128x8xf32> to vector<8xf32>
      %22 = vector.shape_cast %21 : vector<8xf32> to vector<1x8xf32>
      %23 = arith.addf %19, %22 : vector<1x8xf32>
      %c0_16 = arith.constant 0 : index
      %c0_17 = arith.constant 0 : index
      %24 = vector.load %arg8[%c0_16, %c0_17] : memref<1x8xf32, #tpu.memory_space<vmem>>, vector<1x8xf32>
      tpu.vector_store %arg8[%c0_16, %c0_17], %23 {strides = array<i32>} : memref<1x8xf32, #tpu.memory_space<vmem>>, vector<1x8xf32>,
      %c0_i32_18 = arith.constant 0 : i32
      %25 = arith.cmpi eq, %arg1, %c0_i32_18 : i32
      %26 = arith.extui %25 : i1 to i32
      %c0_i32_19 = arith.constant 0 : i32
      %27 = arith.cmpi ne, %26, %c0_i32_19 : i32
      scf.if %27 {
        %c0_20 = arith.constant 0 : index
        %c0_21 = arith.constant 0 : index
        %28 = vector.load %arg7[%c0_20, %c0_21] : memref<1x8xf32, #tpu.memory_space<vmem>>, vector<1x8xf32>
        %cst_22 = arith.constant 7.812500e-03 : f32
        %29 = vector.broadcast %cst_22 : f32 to vector<1x8xf32>
        %30 = arith.mulf %28, %29 : vector<1x8xf32>
        %c0_23 = arith.constant 0 : index
        %c0_24 = arith.constant 0 : index
        %31 = vector.load %arg8[%c0_23, %c0_24] : memref<1x8xf32, #tpu.memory_space<vmem>>, vector<1x8xf32>
        %cst_25 = arith.constant 7.812500e-03 : f32
        %32 = vector.broadcast %cst_25 : f32 to vector<1x8xf32>
        %33 = arith.mulf %31, %32 : vector<1x8xf32>
        %34 = arith.mulf %30, %30 : vector<1x8xf32>
        %35 = arith.subf %33, %34 : vector<1x8xf32>
        %cst_26 = arith.constant 0.000000e+00 : f32
        %36 = vector.broadcast %cst_26 : f32 to vector<1x8xf32>
        %37 = arith.maximumf %35, %36 : vector<1x8xf32>
        %c0_27 = arith.constant 0 : index
        %c0_28 = arith.constant 0 : index
        %38 = vector.load %arg4[%c0_27, %c0_28] : memref<1x8xf32, #tpu.memory_space<vmem>>, vector<1x8xf32>
        %cst_29 = arith.constant 9.99999974E-6 : f32
        %39 = vector.broadcast %cst_29 : f32 to vector<1x8xf32>
        %40 = arith.addf %37, %39 : vector<1x8xf32>
        %41 = math.rsqrt %40 : vector<1x8xf32>
        %42 = arith.mulf %38, %41 : vector<1x8xf32>
        %c0_30 = arith.constant 0 : index
        %c0_31 = arith.constant 0 : index
        %43 = vector.load %arg9[%c0_30, %c0_31] : memref<1x8xf32, #tpu.memory_space<vmem>>, vector<1x8xf32>
        tpu.vector_store %arg9[%c0_30, %c0_31], %42 {strides = array<i32>} : memref<1x8xf32, #tpu.memory_space<vmem>>, vector<1x8xf32>,
        %c0_32 = arith.constant 0 : index
        %c0_33 = arith.constant 0 : index
        %44 = vector.load %arg5[%c0_32, %c0_33] : memref<1x8xf32, #tpu.memory_space<vmem>>, vector<1x8xf32>
        %45 = arith.mulf %30, %42 : vector<1x8xf32>
        %46 = arith.subf %44, %45 : vector<1x8xf32>
        %c0_34 = arith.constant 0 : index
        %c0_35 = arith.constant 0 : index
        %47 = vector.load %arg10[%c0_34, %c0_35] : memref<1x8xf32, #tpu.memory_space<vmem>>, vector<1x8xf32>
        tpu.vector_store %arg10[%c0_34, %c0_35], %46 {strides = array<i32>} : memref<1x8xf32, #tpu.memory_space<vmem>>, vector<1x8xf32>,
      } else {
      }
    } else {
    }
    %c1_i32 = arith.constant 1 : i32
    %8 = arith.cmpi eq, %arg0, %c1_i32 : i32
    %9 = arith.extui %8 : i1 to i32
    %c0_i32_5 = arith.constant 0 : i32
    %10 = arith.cmpi ne, %9, %c0_i32_5 : i32
    scf.if %10 {
      %c0_6 = arith.constant 0 : index
      %c0_7 = arith.constant 0 : index
      %11 = vector.load %arg9[%c0_6, %c0_7] : memref<1x8xf32, #tpu.memory_space<vmem>>, vector<1x8xf32>
      %12 = vector.broadcast %11 : vector<1x8xf32> to vector<128x8xf32>
      %13 = arith.mulf %4, %12 : vector<128x8xf32>
      %c0_8 = arith.constant 0 : index
      %c0_9 = arith.constant 0 : index
      %14 = vector.load %arg10[%c0_8, %c0_9] : memref<1x8xf32, #tpu.memory_space<vmem>>, vector<1x8xf32>
      %15 = vector.broadcast %14 : vector<1x8xf32> to vector<128x8xf32>
      %16 = arith.addf %13, %15 : vector<128x8xf32>
      %c0_10 = arith.constant 0 : index
      %c0_11 = arith.constant 0 : index
      %17 = vector.load %arg6[%c0_10, %c0_11] : memref<128x8xf32, #tpu.memory_space<vmem>>, vector<128x8xf32>
      tpu.vector_store %arg6[%c0_10, %c0_11], %16 {strides = array<i32>} : memref<128x8xf32, #tpu.memory_space<vmem>>, vector<128x8xf32>,
    } else {
    }
    return
  }
  func.func @transform_0(%arg0: i32, %arg1: i32) -> (i32, i32) {
    %c0_i32 = arith.constant 0 : i32
    %c0_i32_0 = arith.constant 0 : i32
    return %arg1, %c0_i32 : i32, i32
  }
  func.func @transform_1(%arg0: i32, %arg1: i32) -> (i32, i32) {
    %c0_i32 = arith.constant 0 : i32
    %c0_i32_0 = arith.constant 0 : i32
    %c0_i32_1 = arith.constant 0 : i32
    return %c0_i32, %c0_i32_0 : i32, i32
  }
  func.func @transform_2(%arg0: i32, %arg1: i32) -> (i32, i32) {
    %c0_i32 = arith.constant 0 : i32
    %c0_i32_0 = arith.constant 0 : i32
    %c0_i32_1 = arith.constant 0 : i32
    return %c0_i32, %c0_i32_0 : i32, i32
  }
  func.func @transform_3(%arg0: i32, %arg1: i32) -> (i32, i32) {
    %c0_i32 = arith.constant 0 : i32
    %c0_i32_0 = arith.constant 0 : i32
    %c0_i32_1 = arith.constant 0 : i32
    return %c0_i32, %c0_i32_0 : i32, i32
  }
  func.func @transform_4(%arg0: i32, %arg1: i32) -> (i32, i32) {
    %0 = arith.muli %arg0, %arg1 : i32
    %c0_i32 = arith.constant 0 : i32
    %c0_i32_0 = arith.constant 0 : i32
    return %0, %c0_i32 : i32, i32
  }
}

</mosaic_0001>

<bundles_post_ra>
// kernel: factorized_reduce.1
= control target key start
LH: loop header
LB: loop body
LE: loop exit
PB: predicated region body
PF: predicated region fallthrough
CT: control target
= control target key end

     0   :  { %s821_s15 = smov 0   ;;  %s823_s16 = smov 0   ;;  %s1115_s0 = inlined_call_operand.vmem [shape: bf16[128,8], index: 0, kind: input, shape index: {}]   ;;  %s1116_s1 = inlined_call_operand.vmem [shape: bf16[8,8], index: 1, kind: input, shape index: {}]   ;;  %s1117_s2 = inlined_call_operand.vmem [shape: f32[1,8], index: 2, kind: input, shape index: {}]   ;;  %s1118_s3 = inlined_call_operand.vmem [shape: f32[1,8], index: 3, kind: input, shape index: {}]   ;;  %s1119_s4 = inlined_call_operand.vmem [shape: f32[128,8], index: 4, kind: output, shape index: {}]  }
   0x1   :  { %s825_s17 = smov 0  }
   0x2 LB: > { %s26_s18 = sadd.s32 1, %s788_s16  ;;  %p686_p0 = scmp.ge.s32.totalorder %s792_s17, 1  ;;  %s792_s17 = sphi %s825_s17, %s14_s17   ;;  %s788_s16 = sphi %s823_s16, %s1121_s16   ;;  %s784_s15 = sphi %s821_s15, %s1120_s15  }
   0x3   : > { %p28_p1 = scmp.ge.s32.totalorder %s26_s18, 2  ;;  %p177_p2 = scmp.lt.s32.totalorder %s792_s17, 3 }
   0x5   : > { %s1123_s18 = smov (%p28_p1, %s26_s18), 0  ;;  %p178_p3 = pnand %p686_p0, %p177_p2 }
   0x6   : > { %v251_v0 = vld [vmem:[%s1116_s1] sm:$0xf] (!%p178_p3)  ;;  %vm317_vm0 = vcmask (!%p178_p3), 1043456   ;;  %v220_v3 = vld [vmem:[%s1115_s0 + $0x4] sm:$0xf] (!%p178_p3)  ;;  %v794_v4 = vmov (!%p178_p3), 0  }
   0x7   : > { %181 = sbr.rel (%p178_p3) target bundleno = 327 (0x147), region = 36  ;;  %v219_v1 = vld [vmem:[%s1115_s0] sm:$0xf] (!%p178_p3)  ;;  %740 = vmatprep.subr.msk.bf16.mxu0 (!%p178_p3), %vm317_vm0, %v251_v0  ;;  %741 = vmatprep.subr.msk.bf16.mxu1 (!%p178_p3), %vm317_vm0, %v251_v0  ;;  %v319_v2 = vsel (!%p178_p3), %vm317_vm0, %v251_v0, 0  ;;  %vm292_vm1 = vcmask (!%p178_p3), 64512   ;;  %v236_v7 = vmax.bf16 (!%p178_p3), %v794_v4, %v220_v3  ;;  %p703_p4 = scmp.ne.s32.totalorder (!%p178_p3), %s784_s15, 0 }
   0x8   : > { %v235_v5 = vmax.bf16 (!%p178_p3), %v794_v4, %v219_v1  ;;  %v227_v6 = vld [vmem:[%s1115_s0 + $0x20] sm:$0xf] (!%p178_p3)  ;;  %721 = vmatpush3.bf16.msra.mxu0 (!%p178_p3), %v319_v2  ;;  %739 = vmatpush3.bf16.msra.mxu1 (!%p178_p3), %v319_v2  ;;  %v228_v8 = vld [vmem:[%s1115_s0 + $0x24] sm:$0xf] (!%p178_p3)  ;;  %v221_v10 = vld [vmem:[%s1115_s0 + $0x8] sm:$0xf] (!%p178_p3) }
   0x9   : > { %v243_v9 = vmax.bf16 (!%p178_p3), %v794_v4, %v227_v6  ;;  %v222_v11 = vld [vmem:[%s1115_s0 + $0xc] sm:$0xf] (!%p178_p3)  ;;  %v244_v12 = vmax.bf16 (!%p178_p3), %v794_v4, %v228_v8  ;;  %v237_v13 = vmax.bf16 (!%p178_p3), %v794_v4, %v221_v10  ;;  %v229_v15 = vld [vmem:[%s1115_s0 + $0x28] sm:$0xf] (!%p178_p3)  ;;  %v223_v17 = vld [vmem:[%s1115_s0 + $0x10] sm:$0xf] (!%p178_p3) }
   0xa   : > { %v238_v14 = vmax.bf16 (!%p178_p3), %v794_v4, %v222_v11  ;;  %v230_v16 = vld [vmem:[%s1115_s0 + $0x2c] sm:$0xf] (!%p178_p3)  ;;  %v687_v18 = vcombine.low (!%p178_p3), %v235_v5, %v236_v7  ;;  %v245_v19 = vmax.bf16 (!%p178_p3), %v794_v4, %v229_v15  ;;  %v224_v21 = vld [vmem:[%s1115_s0 + $0x14] sm:$0xf] (!%p178_p3)  ;;  %v239_v22 = vmax.bf16 (!%p178_p3), %v794_v4, %v223_v17  ;;  %v231_v23 = vld [vmem:[%s1115_s0 + $0x30] sm:$0xf] (!%p178_p3) }
   0xb   : > { %v246_v20 = vmax.bf16 (!%p178_p3), %v794_v4, %v230_v16  ;;  %v232_v24 = vld [vmem:[%s1115_s0 + $0x34] sm:$0xf] (!%p178_p3)  ;;  %v691_v25 = vcombine.low (!%p178_p3), %v243_v9, %v244_v12  ;;  %v240_v27 = vmax.bf16 (!%p178_p3), %v794_v4, %v224_v21  ;;  %v247_v28 = vmax.bf16 (!%p178_p3), %v794_v4, %v231_v23  ;;  %v225_v29 = vld [vmem:[%s1115_s0 + $0x18] sm:$0xf] (!%p178_p3)  ;;  %v226_v30 = vld [vmem:[%s1115_s0 + $0x1c] sm:$0xf] (!%p178_p3) }
   0xc   : > { %v688_v26 = vcombine.low (!%p178_p3), %v237_v13, %v238_v14  ;;  %v233_v31 = vld [vmem:[%s1115_s0 + $0x38] sm:$0xf] (!%p178_p3)  ;;  %722 = vmatprep.mubr.msk.bf16.mxu0 (!%p178_p3), %vm292_vm1, %v687_v18  ;;  %v248_v33 = vmax.bf16 (!%p178_p3), %v794_v4, %v232_v24  ;;  %v234_v34 = vld [vmem:[%s1115_s0 + $0x3c] sm:$0xf] (!%p178_p3)  ;;  %v241_v36 = vmax.bf16 (!%p178_p3), %v794_v4, %v225_v29  ;;  %v242_v37 = vmax.bf16 (!%p178_p3), %v794_v4, %v226_v30 }
   0xd   : > { %v692_v32 = vcombine.low (!%p178_p3), %v245_v19, %v246_v20  ;;  %730 = vmatprep.mubr.msk.bf16.mxu1 (!%p178_p3), %vm292_vm1, %v691_v25  ;;  %v689_v35 = vcombine.low (!%p178_p3), %v239_v22, %v240_v27  ;;  %v249_v39 = vmax.bf16 (!%p178_p3), %v794_v4, %v233_v31  ;;  %v250_v40 = vmax.bf16 (!%p178_p3), %v794_v4, %v234_v34 }
   0xe   : > { %723 = vmatmul.mubr.msk.bf16.vlgmr.msra.gmra.mrb[0].mxu0 %vm292_vm1, %v688_v26  ;;  %v693_v38 = vcombine.low %v247_v28, %v248_v33  ;;  %v690_v41 = vcombine.low %v241_v36, %v242_v37  ;;  %vm426_vm2 = vcmask (!%p703_p4), 57344   ;;  %v795_v61 = vmov (!%p703_p4), 0.0  }
   0xf   : > { %731 = vmatmul.mubr.msk.bf16.vlgmr.msra.gmra.mrb[0].mxu1 %vm292_vm1, %v692_v32  ;;  %726 = vmatprep.mubr.msk.bf16.mxu0 %vm292_vm1, %v689_v35  ;;  %v694_v42 = vcombine.low %v249_v39, %v250_v40  ;;  %427 = vst.msk [vmem:[#allocation2] sm:$0x1] (!%p703_p4), %vm426_vm2, %v795_v61  ;;  %428 = vst.msk [vmem:[#allocation3] sm:$0x1] (!%p703_p4), %vm426_vm2, %v795_v61 }
  0x10   : > { %734 = vmatprep.mubr.msk.bf16.mxu1 %vm292_vm1, %v693_v38 }
  0x16   : > { %727 = vmatmul.mubr.msk.bf16.gmra.mrb[4].mxu0 %vm292_vm1, %v690_v41 }
  0x17   : > { %735 = vmatmul.mubr.msk.bf16.gmra.mrb[4].mxu1 %vm292_vm1, %v694_v42 }
  0xe1   : > { %v900_v43 = vpop.f32.mrb[0].mxu0 }
  0xe2   : > { %v902_v44 = vpop.f32.mrb[0].mxu1  ;;  %v904_v45 = vpop.f32.mrb[1].mxu0  ;;  %v433_v63 = vsel (!%p703_p4), %vm292_vm1, %v900_v43, 0.0  ;;  %v473_v7 = vmul.f32 (!%p703_p4), %v900_v43, %v900_v43 }
  0xe3   : > { %v906_v46 = vpop.f32.mrb[1].mxu1  ;;  %v908_v47 = vpop.f32.mrb[2].mxu0  ;;  %v430_v59 = vsel (!%p703_p4), %vm292_vm1, %v904_v45, 0.0  ;;  %v471_v4 = vmul.f32 (!%p703_p4), %v904_v45, %v904_v45  ;;  %v449_v29 = vsel (!%p703_p4), %vm292_vm1, %v902_v44, 0.0  ;;  %v481_v61 = vmul.f32 (!%p703_p4), %v902_v44, %v902_v44 }
  0xe4   : > { %v910_v48 = vpop.f32.mrb[2].mxu1  ;;  %v912_v49 = vpop.f32.mrb[3].mxu0  ;;  %v435_v0 = vsel (!%p703_p4), %vm292_vm1, %v908_v47, 0.0  ;;  %v474_v10 = vmul.f32 (!%p703_p4), %v908_v47, %v908_v47  ;;  %v490_v16 = vsel (!%p703_p4), %vm292_vm1, %v473_v7, 0.0  ;;  %v445_v19 = vsel (!%p703_p4), %vm292_vm1, %v906_v46, 0.0 }
  0xe5   : > { %v914_v50 = vpop.f32.mrb[3].mxu1  ;;  %v431_v60 = vsel (!%p703_p4), %vm292_vm1, %v912_v49, 0.0  ;;  %v472_v6 = vmul.f32 (!%p703_p4), %v912_v49, %v912_v49  ;;  %v487_v12 = vsel (!%p703_p4), %vm292_vm1, %v471_v4, 0.0  ;;  %v451_v34 = vsel (!%p703_p4), %vm292_vm1, %v910_v48, 0.0 }
  0xe6   : > { %v432_v62 = vadd.f32 (!%p703_p4), %v431_v60, %v430_v59  ;;  %v492_v21 = vsel (!%p703_p4), %vm292_vm1, %v474_v10, 0.0  ;;  %v447_v24 = vsel (!%p703_p4), %vm292_vm1, %v914_v50, 0.0  ;;  %v479_v35 = vmul.f32 (!%p703_p4), %v906_v46, %v906_v46 }
  0xe7   : > { %421 = sbr.rel (%p703_p4) target bundleno = 310 (0x136), region = 40  ;;  %v488_v15 = vsel (!%p703_p4), %vm292_vm1, %v472_v6, 0.0  ;;  %v480_v40 = vmul.f32 (!%p703_p4), %v914_v50, %v914_v50 }
  0xe8   : > { %v434_v1 = vadd.f32 (!%p703_p4), %v433_v63, %v432_v62  ;;  %v489_v18 = vadd.f32 (!%p703_p4), %v488_v15, %v487_v12  ;;  %v502_v62 = vsel (!%p703_p4), %vm292_vm1, %v479_v35, 0.0 }
  0xe9   : > { %v916_v51 = vpop.f32.mrb[4].mxu0 }
  0xea   : > { %v918_v52 = vpop.f32.mrb[4].mxu1  ;;  %v920_v53 = vpop.f32.mrb[5].mxu0  ;;  %v436_v3 = vadd.f32 (!%p703_p4), %v435_v0, %v434_v1  ;;  %v441_v9 = vsel (!%p703_p4), %vm292_vm1, %v916_v51, 0.0  ;;  %v491_v23 = vadd.f32 (!%p703_p4), %v490_v16, %v489_v18  ;;  %v477_v25 = vmul.f32 (!%p703_p4), %v916_v51, %v916_v51 }
  0xeb   : > { %v922_v54 = vpop.f32.mrb[5].mxu1  ;;  %v924_v55 = vpop.f32.mrb[6].mxu0  ;;  %v437_v2 = vsel (!%p703_p4), %vm292_vm1, %v920_v53, 0.0  ;;  %v475_v14 = vmul.f32 (!%p703_p4), %v920_v53, %v920_v53  ;;  %v457_v1 = vsel (!%p703_p4), %vm292_vm1, %v918_v52, 0.0  ;;  %v485_v15 = vmul.f32 (!%p703_p4), %v918_v52, %v918_v52 }
  0xec   : > { %v926_v56 = vpop.f32.mrb[6].mxu1  ;;  %v928_v57 = vpop.f32.mrb[7].mxu0  ;;  %v438_v8 = vadd.f32 (!%p703_p4), %v437_v2, %v436_v3  ;;  %v443_v13 = vsel (!%p703_p4), %vm292_vm1, %v924_v55, 0.0  ;;  %v493_v28 = vadd.f32 (!%p703_p4), %v492_v21, %v491_v23  ;;  %v478_v30 = vmul.f32 (!%p703_p4), %v924_v55, %v924_v55 }
  0xed   : > { %v930_v58 = vpop.f32.mrb[7].mxu1  ;;  %v439_v5 = vsel (!%p703_p4), %vm292_vm1, %v928_v57, 0.0  ;;  %v476_v20 = vmul.f32 (!%p703_p4), %v928_v57, %v928_v57  ;;  %v494_v26 = vsel (!%p703_p4), %vm292_vm1, %v475_v14, 0.0  ;;  %v498_v36 = vsel (!%p703_p4), %vm292_vm1, %v477_v25, 0.0 }
  0xee   : > { %v440_v11 = vadd.f32 %v439_v5, %v438_v8  ;;  %v495_v33 = vadd.f32 %v494_v26, %v493_v28  ;;  %v453_v39 = vsel %vm292_vm1, %v922_v54, 0.0  ;;  %v500_v41 = vsel %vm292_vm1, %v478_v30, 0.0 }
  0xef   : > { %v496_v31 = vsel %vm292_vm1, %v476_v20, 0.0  ;;  %v455_v60 = vsel %vm292_vm1, %v930_v58, 0.0  ;;  %v482_v2 = vmul.f32 %v910_v48, %v910_v48  ;;  %v504_v3 = vsel %vm292_vm1, %v480_v40, 0.0 }
  0xf0   : > { %v442_v17 = vadd.f32 %v441_v9, %v440_v11  ;;  %v497_v38 = vadd.f32 %v496_v31, %v495_v33  ;;  %v459_v6 = vsel %vm292_vm1, %v926_v56, 0.0  ;;  %v483_v7 = vmul.f32 %v922_v54, %v922_v54  ;;  %v429_v31 = vld [vmem:[#allocation2] sm:$0x1] }
  0xf1   : > { %v506_v8 = vsel %vm292_vm1, %v481_v61, 0.0  ;;  %v484_v11 = vmul.f32 %v930_v58, %v930_v58  ;;  %v508_v12 = vsel %vm292_vm1, %v482_v2, 0.0  ;;  %v514_v23 = vsel %vm292_vm1, %v485_v15, 0.0  ;;  %v536_v2 = vld [vmem:[%s1117_s2] sm:$0x1] }
  0xf2   : > { %v444_v22 = vadd.f32 %v443_v13, %v442_v17  ;;  %v499_v59 = vadd.f32 %v498_v36, %v497_v38  ;;  %v510_v16 = vsel %vm292_vm1, %v483_v7, 0.0 }
  0xf3   : > { %v512_v20 = vsel %vm292_vm1, %v484_v11, 0.0 }
  0xf4   : > { %v446_v27 = vadd.f32 %v445_v19, %v444_v22  ;;  %v501_v0 = vadd.f32 %v500_v41, %v499_v59  ;;  %v486_v19 = vmul.f32 %v926_v56, %v926_v56 }
  0xf6   : > { %v448_v32 = vadd.f32 %v447_v24, %v446_v27  ;;  %v503_v5 = vadd.f32 %v502_v62, %v501_v0  ;;  %v516_v26 = vsel %vm292_vm1, %v486_v19, 0.0 }
  0xf8   : > { %v450_v37 = vadd.f32 %v449_v29, %v448_v32  ;;  %v505_v10 = vadd.f32 %v504_v3, %v503_v5  ;;  %v541_v5 = vld [vmem:[%s1118_s3] sm:$0x1] }
  0xfa   : > { %v452_v42 = vadd.f32 %v451_v34, %v450_v37  ;;  %v507_v14 = vadd.f32 %v506_v8, %v505_v10 }
  0xfc   : > { %v454_v63 = vadd.f32 %v453_v39, %v452_v42  ;;  %v509_v18 = vadd.f32 %v508_v12, %v507_v14  ;;  %v470_v39 = vld [vmem:[#allocation3] sm:$0x1] }
  0xfe   : > { %v456_v4 = vadd.f32 %v455_v60, %v454_v63  ;;  %v511_v22 = vadd.f32 %v510_v16, %v509_v18 }
 0x100   : > { %v458_v9 = vadd.f32 %v457_v1, %v456_v4  ;;  %v513_v25 = vadd.f32 %v512_v20, %v511_v22 }
 0x102   : > { %v460_v13 = vadd.f32 %v459_v6, %v458_v9  ;;  %v515_v28 = vadd.f32 %v514_v23, %v513_v25 }
 0x104   : > { %v461_v17 = vrot.slane %v460_v13, 4  ;;  %v517_v30 = vadd.f32 %v516_v26, %v515_v28 }
 0x106   : > { %v462_v21 = vadd.f32 %v461_v17, %v460_v13  ;;  %v518_v33 = vrot.slane %v517_v30, 4 }
 0x108   : > { %v463_v24 = vrot.slane %v462_v21, 2  ;;  %v519_v35 = vadd.f32 %v518_v33, %v517_v30 }
 0x10a   : > { %v464_v27 = vadd.f32 %v463_v24, %v462_v21  ;;  %v520_v36 = vrot.slane %v519_v35, 2 }
 0x10c   : > { %v465_v29 = vrot.slane %v464_v27, 1  ;;  %v521_v37 = vadd.f32 %v520_v36, %v519_v35 }
 0x10e   : > { %v466_v32 = vadd.f32 %v465_v29, %v464_v27  ;;  %v522_v38 = vrot.slane %v521_v37, 1 }
 0x110   : > { %v467_v34 = vadd.f32 %v466_v32, %v429_v31  ;;  %v523_v40 = vadd.f32 %v522_v38, %v521_v37 }
 0x112   : > { %469 = vst.msk [vmem:[#allocation2] sm:$0x1] %vm426_vm2, %v467_v34  ;;  %v524_v41 = vadd.f32 %v523_v40, %v470_v39 }
 0x114   : > { %525 = vst.msk [vmem:[#allocation3] sm:$0x1] %vm426_vm2, %v524_v41 }
 0x119   : > { %v529_v42 = vld [vmem:[#allocation2] sm:$0x1] }
 0x11a   : > { %v530_v59 = vmul.f32 0.0078125, %v529_v42 }
 0x11b   : > { %v531_v61 = vld [vmem:[#allocation3] sm:$0x1] }
 0x11c   : > { %v533_v60 = vmul.f32 %v530_v59, %v530_v59  ;;  %v532_v62 = vmul.f32 0.0078125, %v531_v61 }
 0x11e   : > { %v534_v63 = vsub.f32 %v532_v62, %v533_v60 }
 0x120   : > { %v535_v0 = vmax.f32 %v534_v63, 0.0 }
 0x122   : > { %v537_v1 = vadd.f32 1e-05, %v535_v0 }
 0x124   : > { %768 = vrsqrt.f32 %v537_v1 }
 0x12e   : > { %v769_v3 = vpop.eup %768 }
 0x12f   : > { %v539_v4 = vmul.f32 %v769_v3, %v536_v2 }
 0x131   : > { %540 = vst.msk [vmem:[#allocation4] sm:$0x1] %vm426_vm2, %v539_v4  ;;  %v542_v6 = vmul.f32 %v539_v4, %v530_v59 }
 0x133   : > { %v543_v7 = vsub.f32 %v541_v5, %v542_v6 }
 0x135   : > { %544 = vst.msk [vmem:[#allocation5] sm:$0x1] %vm426_vm2, %v543_v7 }
 0x136 PF: > { %p704_p5 = scmp.ne.s32.totalorder %s784_s15, 1 }
 0x138   : > { %548 = sbr.rel (%p704_p5) target bundleno = 327 (0x147), region = 52  ;;  %v705_v8 = vld [vmem:[#allocation4] ss:$0 sm:$0xff] (!%p704_p5) }
 0x139   : > { %v556_v10 = vmul.f32 (!%p704_p5), %v705_v8, %v904_v45  ;;  %v557_v11 = vmul.f32 (!%p704_p5), %v705_v8, %v912_v49  ;;  %v558_v12 = vmul.f32 (!%p704_p5), %v900_v43, %v705_v8  ;;  %v559_v13 = vmul.f32 (!%p704_p5), %v908_v47, %v705_v8 }
 0x13a   : > { %v560_v14 = vmul.f32 (!%p704_p5), %v705_v8, %v920_v53  ;;  %v561_v15 = vmul.f32 (!%p704_p5), %v705_v8, %v928_v57  ;;  %v562_v16 = vmul.f32 (!%p704_p5), %v916_v51, %v705_v8  ;;  %v563_v17 = vmul.f32 (!%p704_p5), %v924_v55, %v705_v8 }
 0x13b   : > { %v564_v43 = vmul.f32 (!%p704_p5), %v705_v8, %v906_v46  ;;  %v565_v47 = vmul.f32 (!%p704_p5), %v705_v8, %v914_v50  ;;  %v566_v51 = vmul.f32 (!%p704_p5), %v902_v44, %v705_v8  ;;  %v567_v53 = vmul.f32 (!%p704_p5), %v910_v48, %v705_v8 }
 0x13c   : > { %v706_v9 = vld [vmem:[#allocation5] ss:$0 sm:$0xff] (!%p704_p5)  ;;  %v568_v44 = vmul.f32 (!%p704_p5), %v705_v8, %v922_v54  ;;  %v569_v46 = vmul.f32 (!%p704_p5), %v705_v8, %v930_v58  ;;  %v570_v48 = vmul.f32 (!%p704_p5), %v918_v52, %v705_v8  ;;  %v571_v50 = vmul.f32 (!%p704_p5), %v926_v56, %v705_v8 }
 0x13d   : > { %v579_v18 = vadd.f32 (!%p704_p5), %v706_v9, %v556_v10  ;;  %v580_v19 = vadd.f32 (!%p704_p5), %v706_v9, %v557_v11  ;;  %v581_v20 = vadd.f32 (!%p704_p5), %v706_v9, %v558_v12  ;;  %v582_v21 = vadd.f32 (!%p704_p5), %v706_v9, %v559_v13 }
 0x13e   : > { %v583_v22 = vadd.f32 (!%p704_p5), %v706_v9, %v560_v14  ;;  %v584_v45 = vadd.f32 (!%p704_p5), %v706_v9, %v561_v15  ;;  %v585_v23 = vadd.f32 (!%p704_p5), %v706_v9, %v562_v16  ;;  %v586_v49 = vadd.f32 (!%p704_p5), %v706_v9, %v563_v17 }
 0x13f   : > { %595 = vst.msk [vmem:[%s1119_s4] sm:$0xff] %vm292_vm1, %v579_v18  ;;  %596 = vst.msk [vmem:[%s1119_s4 + $0x8] sm:$0xff] %vm292_vm1, %v580_v19  ;;  %v587_v55 = vadd.f32 %v706_v9, %v564_v43  ;;  %v588_v57 = vadd.f32 %v706_v9, %v565_v47  ;;  %v589_v24 = vadd.f32 %v706_v9, %v566_v51 }
 0x140   : > { %597 = vst.msk [vmem:[%s1119_s4 + $0x10] sm:$0xff] %vm292_vm1, %v581_v20  ;;  %598 = vst.msk [vmem:[%s1119_s4 + $0x18] sm:$0xff] %vm292_vm1, %v582_v21  ;;  %v590_v25 = vadd.f32 %v706_v9, %v567_v53  ;;  %v591_v26 = vadd.f32 %v706_v9, %v568_v44  ;;  %v592_v27 = vadd.f32 %v706_v9, %v569_v46 }
 0x141   : > { %599 = vst.msk [vmem:[%s1119_s4 + $0x20] sm:$0xff] %vm292_vm1, %v583_v22  ;;  %600 = vst.msk [vmem:[%s1119_s4 + $0x28] sm:$0xff] %vm292_vm1, %v584_v45  ;;  %v593_v28 = vadd.f32 %v706_v9, %v570_v48  ;;  %v594_v29 = vadd.f32 %v706_v9, %v571_v50 }
 0x142   : > { %601 = vst.msk [vmem:[%s1119_s4 + $0x30] sm:$0xff] %vm292_vm1, %v585_v23  ;;  %602 = vst.msk [vmem:[%s1119_s4 + $0x38] sm:$0xff] %vm292_vm1, %v586_v49 }
 0x143   : > { %603 = vst.msk [vmem:[%s1119_s4 + $0x40] sm:$0xff] %vm292_vm1, %v587_v55  ;;  %604 = vst.msk [vmem:[%s1119_s4 + $0x48] sm:$0xff] %vm292_vm1, %v588_v57 }
 0x144   : > { %605 = vst.msk [vmem:[%s1119_s4 + $0x50] sm:$0xff] %vm292_vm1, %v589_v24  ;;  %606 = vst.msk [vmem:[%s1119_s4 + $0x58] sm:$0xff] %vm292_vm1, %v590_v25 }
 0x145   : > { %607 = vst.msk [vmem:[%s1119_s4 + $0x60] sm:$0xff] %vm292_vm1, %v591_v26  ;;  %608 = vst.msk [vmem:[%s1119_s4 + $0x68] sm:$0xff] %vm292_vm1, %v592_v27 }
 0x146   : > { %609 = vst.msk [vmem:[%s1119_s4 + $0x70] sm:$0xff] %vm292_vm1, %v593_v28  ;;  %610 = vst.msk [vmem:[%s1119_s4 + $0x78] sm:$0xff] %vm292_vm1, %v594_v29 }
 0x147 PF: > { %s14_s17 = sadd.s32 1, %s792_s17   ;;  %s1120_s15 = smov %s788_s16 }
 0x148   : > { %p11_p6 = scmp.ge.s32.totalorder %s14_s17, 4   ;;  %s1121_s16 = smov %s1123_s18 }
 0x14a   :  { %13 = sbr.rel (!%p11_p6) target bundleno = 2 (0x2), region = 82 }

</bundles_post_ra>
